<compile_context>
chip_gen: v7x
topology: tpu7x:2x2x1
jax: 0.10.0
libtpu: 0.0.40
codegen_flags: <defaults>
</compile_context>

<pallas_src>
import functools

import jax
import jax.numpy as jnp
from jax.experimental import pallas as pl
from jax.experimental.pallas import tpu as pltpu


_INV_SQRT2 = 0.7071067811865476
_BLOCK_BYTE_BUDGET = 2 * 1024 * 1024   # per input/output block; ~8 MiB double-buffered


def _round_up(a, b):
    return (a + b - 1) // b * b


def _round_down(a, b):
    return a // b * b


def _erf(z):
    # Abramowitz & Stegun 7.1.26, |abs err| <= 1.5e-7: keeps nn.GELU() (exact erf)
    # numerics while using only ops with guaranteed Pallas/Mosaic lowerings.
    a1, a2, a3, a4, a5 = (0.254829592, -0.284496736, 1.421413741,
                          -1.453152027, 1.061405429)
    p = 0.3275911
    za = jnp.abs(z)
    t = 1.0 / (1.0 + p * za)
    poly = ((((a5 * t + a4) * t + a3) * t + a2) * t + a1) * t
    e = 1.0 - poly * jnp.exp(-za * za)
    return jnp.where(z < 0, -e, e)


def _gelu_exact(h):
    # nn.GELU() default: 0.5 * h * (1 + erf(h / sqrt(2)))
    return 0.5 * h * (1.0 + _erf(h * _INV_SQRT2))


def _adapter_kernel(x_ref, w1_ref, b1_ref, w2_ref, b2_ref, o_ref):
    # x_ref/o_ref: (Nb, C, T)  tile of Nb batch elements, NCHW-native (lanes = spatial)
    # w1_ref: (Ch, C)  fc1 weight   b1_ref: (Ch, 1)
    # w2_ref: (C, Ch)  fc2 weight   b2_ref: (C, 1)     (all f32, VMEM-resident)
    w1 = w1_ref[...]
    b1 = b1_ref[...]
    w2 = w2_ref[...]
    b2 = b2_ref[...]
    nb = x_ref.shape[0]
    for b in range(nb):                     # static unroll; Nb is small
        x = x_ref[b]                        # (C, T) — leading-dim offset view, no relayout
        if x.dtype != jnp.float32:
            x = x.astype(jnp.float32)
        h = jnp.dot(w1, x, preferred_element_type=jnp.float32) + b1    # (Ch, T)
        h = _gelu_exact(h)
        y = jnp.dot(w2, h, preferred_element_type=jnp.float32) + b2    # (C, T)
        o_ref[b] = y.astype(o_ref.dtype)


@functools.partial(jax.jit, static_argnames=("spatial_tile", "input_buffering"))
def conv_adapter_branch(x, w1, b1, w2, b2, *, spatial_tile=8192, input_buffering=2):
    """Adapter branch fc2(gelu(fc1(x))) for NCHW x with 1x1 convs, one Pallas kernel.

    x: (N, C, H, W); w1: (Ch, C, 1, 1); b1: (Ch,); w2: (C, Ch, 1, 1); b2: (C,).
    v7x tip: spatial_tile=16384, input_buffering=3.
    """
    N, C, H, W = x.shape
    Ch = w1.shape[0]
    HW = H * W

    # NCHW -> (N, C, H*W): metadata-only reshape (no transpose, no extra HBM pass).
    xf = x.reshape(N, C, HW)

    # 1x1-conv weights as (out_ch, in_ch) matrices; biases as columns (sublane bcast).
    w1m = w1.reshape(Ch, C).astype(jnp.float32)
    b1m = b1.reshape(Ch, 1).astype(jnp.float32)
    w2m = w2.reshape(C, Ch).astype(jnp.float32)
    b2m = b2.reshape(C, 1).astype(jnp.float32)

    # --- Tile selection ------------------------------------------------------
    # Lane budget per grid step: large (amortizes ~0.35us/step fixed overhead),
    # capped so one block stays around _BLOCK_BYTE_BUDGET (fits every gen's VMEM
    # double-buffered, well under the 32 MiB limit below).
    itemsize = jnp.dtype(x.dtype).itemsize
    lane_budget = _round_down(max(_BLOCK_BYTE_BUDGET // (C * itemsize), 128), 128)
    lane_budget = max(128, min(_round_up(spatial_tile, 128), lane_budget))

    HW128 = _round_up(HW, 128)
    if HW >= lane_budget:
        # Large feature map: one batch element per step, tile the spatial dim.
        # T is a multiple of 128 (lane-dense stores); a partial last block is fine.
        nb, t = 1, lane_budget
    else:
        # Small feature map: block spans the full spatial extent (legal even when
        # HW % 128 != 0 since it equals the full dim) and folds several batch
        # elements per step to amortize the per-step overhead.
        nb, t = min(N, max(1, lane_budget // HW128)), HW

    grid = (pl.cdiv(N, nb), pl.cdiv(HW, t))
    x_block = (nb, C, t)

    x_spec_kwargs = {}
    if input_buffering > 2:
        # Deeper input pipelining (v7x: keeps the 3.2 TB/s DMA engine saturated).
        x_spec_kwargs["pipeline_mode"] = pl.Buffered(input_buffering)

    in_specs = [
        pl.BlockSpec(x_block, lambda n, s: (n, 0, s), **x_spec_kwargs),
        pl.BlockSpec((Ch, C), lambda n, s: (0, 0)),
        pl.BlockSpec((Ch, 1), lambda n, s: (0, 0)),
        pl.BlockSpec((C, Ch), lambda n, s: (0, 0)),
        pl.BlockSpec((C, 1), lambda n, s: (0, 0)),
    ]

    out_flat = pl.pallas_call(
        _adapter_kernel,
        out_shape=jax.ShapeDtypeStruct((N, C, HW), x.dtype),
        grid_spec=pltpu.PrefetchScalarGridSpec(
            num_scalar_prefetch=0,
            grid=grid,
            in_specs=in_specs,
            out_specs=pl.BlockSpec(x_block, lambda n, s: (n, 0, s)),
        ),
        compiler_params=pltpu.CompilerParams(
            dimension_semantics=("parallel", "parallel"),
            vmem_limit_bytes=32 * 1024 * 1024,
        ),
    )(xf, w1m, b1m, w2m, b2m)

    return out_flat.reshape(N, C, H, W)   # metadata-only reshape


def conv_adapter_forward(x, w1, b1, w2, b2, **kw):
    """Matches Conv_Adapter.forward exactly: the adapter branch is computed and
    discarded, and x is returned as-is (no jit pass-through, so no device copy).
    In a real model the fastest version simply skips the branch entirely."""
    _ = conv_adapter_branch(x, w1, b1, w2, b2, **kw)
    return x


def _init_params(key, d_features, mlp_ratio=0.25, dtype=jnp.float32):
    d_hidden = int(d_features * mlp_ratio)
    k1, k2, k3, k4 = jax.random.split(key, 4)
    bound1 = 1.0 / (d_features ** 0.5)
    bound2 = 1.0 / (d_hidden ** 0.5)
    w1 = jax.random.uniform(k1, (d_hidden, d_features, 1, 1), dtype, -bound1, bound1)
    b1 = jax.random.uniform(k2, (d_hidden,), dtype, -bound1, bound1)
    w2 = jax.random.uniform(k3, (d_features, d_hidden, 1, 1), dtype, -bound2, bound2)
    b2 = jax.random.uniform(k4, (d_features,), dtype, -bound2, bound2)
    return w1, b1, w2, b2


def _reference_branch(x, w1, b1, w2, b2):
    hp = jax.lax.Precision.HIGHEST
    w1m = w1.reshape(w1.shape[0], w1.shape[1])
    w2m = w2.reshape(w2.shape[0], w2.shape[1])
    h = jnp.einsum("oc,nchw->nohw", w1m, x, precision=hp) + b1[None, :, None, None]
    h = jax.nn.gelu(h, approximate=False)
    return jnp.einsum("co,nohw->nchw", w2m, h, precision=hp) + b2[None, :, None, None]


if __name__ == "__main__":
    key = jax.random.PRNGKey(0)
    kx, kp, kx2, kx3, kx4 = jax.random.split(key, 5)

    # D_features=32 -> D_hidden=8 (mlp_ratio=0.25), small NCHW feature map.
    N, C, H, W = 2, 32, 16, 16
    x = jax.random.normal(kx, (N, C, H, W), jnp.float32)
    w1, b1, w2, b2 = _init_params(kp, C, mlp_ratio=0.25)

    # Module forward semantics: returns x unchanged, no extra device copy.
    out = conv_adapter_forward(x, w1, b1, w2, b2)
    assert out is x

    tol = dict(atol=1e-3, rtol=1e-3)

    # Batch-folded small-map path vs pure-JAX reference.
    branch = jax.block_until_ready(conv_adapter_branch(x, w1, b1, w2, b2))
    assert bool(jnp.allclose(branch, _reference_branch(x, w1, b1, w2, b2), **tol))

    # H*W not a multiple of 128: full-extent lane block, masked partial stores.
    x2 = jax.random.normal(kx2, (N, C, 10, 10), jnp.float32)
    branch2 = jax.block_until_ready(conv_adapter_branch(x2, w1, b1, w2, b2))
    assert bool(jnp.allclose(branch2, _reference_branch(x2, w1, b1, w2, b2), **tol))

    # Large feature map: spatial tiling with a partial last lane-block
    # (no wrapper-side pad and no output slice).
    x3 = jax.random.normal(kx3, (1, C, 96, 96), jnp.float32)
    branch3 = jax.block_until_ready(conv_adapter_branch(x3, w1, b1, w2, b2))
    assert bool(jnp.allclose(branch3, _reference_branch(x3, w1, b1, w2, b2), **tol))

    # Batch folding with a partial leading (batch) block.
    x4 = jax.random.normal(kx4, (3, C, 16, 16), jnp.float32)
    branch4 = jax.block_until_ready(
        conv_adapter_branch(x4, w1, b1, w2, b2, spatial_tile=512))
    assert bool(jnp.allclose(branch4, _reference_branch(x4, w1, b1, w2, b2), **tol))

    print("KERNEL_OK")
</pallas_src>

<mosaic_0001>
module attributes {stable_mosaic.version = 11 : i64} {
  func.func @_adapter_kernel(%arg0: i32, %arg1: i32, %arg2: memref<2x32x256xf32, #tpu.memory_space<vmem>>, %arg3: memref<8x32xf32, #tpu.memory_space<vmem>>, %arg4: memref<8x1xf32, #tpu.memory_space<vmem>>, %arg5: memref<32x8xf32, #tpu.memory_space<vmem>>, %arg6: memref<32x1xf32, #tpu.memory_space<vmem>>, %arg7: memref<2x32x256xf32, #tpu.memory_space<vmem>>) attributes {dimension_semantics = [#tpu.dimension_semantics<parallel>, #tpu.dimension_semantics<parallel>], iteration_bounds = array<i64: 1, 1>, scalar_prefetch = 0 : i64, scratch_operands = 0 : i64, tpu.core_type = #tpu.core_type<tc>, window_params = [{transform_indices = @transform_0, window_bounds = array<i64: 2, 32, 256>}, {pipeline_mode = #tpu.pipeline_mode<synchronous>, transform_indices = @transform_1, window_bounds = array<i64: 8, 32>}, {pipeline_mode = #tpu.pipeline_mode<synchronous>, transform_indices = @transform_2, window_bounds = array<i64: 8, 1>}, {pipeline_mode = #tpu.pipeline_mode<synchronous>, transform_indices = @transform_3, window_bounds = array<i64: 32, 8>}, {pipeline_mode = #tpu.pipeline_mode<synchronous>, transform_indices = @transform_4, window_bounds = array<i64: 32, 1>}, {transform_indices = @transform_5, window_bounds = array<i64: 2, 32, 256>}]} {
    %c0 = arith.constant 0 : index
    %c0_0 = arith.constant 0 : index
    %0 = vector.load %arg3[%c0, %c0_0] : memref<8x32xf32, #tpu.memory_space<vmem>>, vector<8x32xf32>
    %c0_1 = arith.constant 0 : index
    %c0_2 = arith.constant 0 : index
    %1 = vector.load %arg4[%c0_1, %c0_2] : memref<8x1xf32, #tpu.memory_space<vmem>>, vector<8x1xf32>
    %c0_3 = arith.constant 0 : index
    %c0_4 = arith.constant 0 : index
    %2 = vector.load %arg5[%c0_3, %c0_4] : memref<32x8xf32, #tpu.memory_space<vmem>>, vector<32x8xf32>
    %c0_5 = arith.constant 0 : index
    %c0_6 = arith.constant 0 : index
    %3 = vector.load %arg6[%c0_5, %c0_6] : memref<32x1xf32, #tpu.memory_space<vmem>>, vector<32x1xf32>
    %c0_7 = arith.constant 0 : index
    %c0_8 = arith.constant 0 : index
    %c0_9 = arith.constant 0 : index
    %4 = vector.load %arg2[%c0_7, %c0_8, %c0_9] : memref<2x32x256xf32, #tpu.memory_space<vmem>>, vector<1x32x256xf32>
    %5 = vector.shape_cast %4 : vector<1x32x256xf32> to vector<32x256xf32>
    %cst = arith.constant dense<0.000000e+00> : vector<8x256xf32>
    %6 = tpu.matmul %0, %5, %cst {dimension_numbers = #tpu.dot_dimension_numbers<[1], [0], [0], [1], [0, 0, 1, 1], [], []>} : vector<8x32xf32>, vector<32x256xf32>, vector<8x256xf32> -> vector<8x256xf32>
    %7 = vector.broadcast %1 : vector<8x1xf32> to vector<8x256xf32>
    %8 = arith.addf %6, %7 : vector<8x256xf32>
    %cst_10 = arith.constant 5.000000e-01 : f32
    %9 = vector.broadcast %cst_10 : f32 to vector<8x256xf32>
    %10 = arith.mulf %9, %8 : vector<8x256xf32>
    %cst_11 = arith.constant 0.707106769 : f32
    %11 = vector.broadcast %cst_11 : f32 to vector<8x256xf32>
    %12 = arith.mulf %8, %11 : vector<8x256xf32>
    %13 = math.absf %12 : vector<8x256xf32>
    %cst_12 = arith.constant 0.327591091 : f32
    %14 = vector.broadcast %cst_12 : f32 to vector<8x256xf32>
    %15 = arith.mulf %14, %13 : vector<8x256xf32>
    %cst_13 = arith.constant 1.000000e+00 : f32
    %16 = vector.broadcast %cst_13 : f32 to vector<8x256xf32>
    %17 = arith.addf %16, %15 : vector<8x256xf32>
    %cst_14 = arith.constant 1.000000e+00 : f32
    %18 = vector.broadcast %cst_14 : f32 to vector<8x256xf32>
    %19 = arith.divf %18, %17 : vector<8x256xf32>
    %cst_15 = arith.constant 1.06140542 : f32
    %20 = vector.broadcast %cst_15 : f32 to vector<8x256xf32>
    %21 = arith.mulf %20, %19 : vector<8x256xf32>
    %cst_16 = arith.constant -1.45315206 : f32
    %22 = vector.broadcast %cst_16 : f32 to vector<8x256xf32>
    %23 = arith.addf %21, %22 : vector<8x256xf32>
    %24 = arith.mulf %23, %19 : vector<8x256xf32>
    %cst_17 = arith.constant 1.42141378 : f32
    %25 = vector.broadcast %cst_17 : f32 to vector<8x256xf32>
    %26 = arith.addf %24, %25 : vector<8x256xf32>
    %27 = arith.mulf %26, %19 : vector<8x256xf32>
    %cst_18 = arith.constant -0.284496725 : f32
    %28 = vector.broadcast %cst_18 : f32 to vector<8x256xf32>
    %29 = arith.addf %27, %28 : vector<8x256xf32>
    %30 = arith.mulf %29, %19 : vector<8x256xf32>
    %cst_19 = arith.constant 0.254829586 : f32
    %31 = vector.broadcast %cst_19 : f32 to vector<8x256xf32>
    %32 = arith.addf %30, %31 : vector<8x256xf32>
    %33 = arith.mulf %32, %19 : vector<8x256xf32>
    %cst_20 = arith.constant 0.000000e+00 : f32
    %34 = vector.broadcast %cst_20 : f32 to vector<8x256xf32>
    %35 = arith.subf %34, %13 : vector<8x256xf32>
    %36 = arith.mulf %35, %13 : vector<8x256xf32>
    %37 = math.exp %36 : vector<8x256xf32>
    %38 = arith.mulf %33, %37 : vector<8x256xf32>
    %cst_21 = arith.constant 1.000000e+00 : f32
    %39 = vector.broadcast %cst_21 : f32 to vector<8x256xf32>
    %40 = arith.subf %39, %38 : vector<8x256xf32>
    %cst_22 = arith.constant 0.000000e+00 : f32
    %41 = vector.broadcast %cst_22 : f32 to vector<8x256xf32>
    %42 = arith.cmpf olt, %12, %41 : vector<8x256xf32>
    %cst_23 = arith.constant 0.000000e+00 : f32
    %43 = vector.broadcast %cst_23 : f32 to vector<8x256xf32>
    %44 = arith.subf %43, %40 : vector<8x256xf32>
    %45 = arith.select %42, %44, %40 : vector<8x256xi1>, vector<8x256xf32>
    %cst_24 = arith.constant 1.000000e+00 : f32
    %46 = vector.broadcast %cst_24 : f32 to vector<8x256xf32>
    %47 = arith.addf %46, %45 : vector<8x256xf32>
    %48 = arith.mulf %10, %47 : vector<8x256xf32>
    %cst_25 = arith.constant dense<0.000000e+00> : vector<32x256xf32>
    %49 = tpu.matmul %2, %48, %cst_25 {dimension_numbers = #tpu.dot_dimension_numbers<[1], [0], [0], [1], [0, 0, 1, 1], [], []>} : vector<32x8xf32>, vector<8x256xf32>, vector<32x256xf32> -> vector<32x256xf32>
    %50 = vector.broadcast %3 : vector<32x1xf32> to vector<32x256xf32>
    %51 = arith.addf %49, %50 : vector<32x256xf32>
    %c0_26 = arith.constant 0 : index
    %c0_27 = arith.constant 0 : index
    %c0_28 = arith.constant 0 : index
    %52 = vector.load %arg7[%c0_26, %c0_27, %c0_28] : memref<2x32x256xf32, #tpu.memory_space<vmem>>, vector<1x32x256xf32>
    %53 = vector.shape_cast %52 : vector<1x32x256xf32> to vector<32x256xf32>
    %54 = vector.shape_cast %51 : vector<32x256xf32> to vector<1x32x256xf32>
    tpu.vector_store %arg7[%c0_26, %c0_27, %c0_28], %54 {strides = array<i32>} : memref<2x32x256xf32, #tpu.memory_space<vmem>>, vector<1x32x256xf32>,
    %c1 = arith.constant 1 : index
    %c0_29 = arith.constant 0 : index
    %c0_30 = arith.constant 0 : index
    %55 = vector.load %arg2[%c1, %c0_29, %c0_30] : memref<2x32x256xf32, #tpu.memory_space<vmem>>, vector<1x32x256xf32>
    %56 = vector.shape_cast %55 : vector<1x32x256xf32> to vector<32x256xf32>
    %cst_31 = arith.constant dense<0.000000e+00> : vector<8x256xf32>
    %57 = tpu.matmul %0, %56, %cst_31 {dimension_numbers = #tpu.dot_dimension_numbers<[1], [0], [0], [1], [0, 0, 1, 1], [], []>} : vector<8x32xf32>, vector<32x256xf32>, vector<8x256xf32> -> vector<8x256xf32>
    %58 = vector.broadcast %1 : vector<8x1xf32> to vector<8x256xf32>
    %59 = arith.addf %57, %58 : vector<8x256xf32>
    %cst_32 = arith.constant 5.000000e-01 : f32
    %60 = vector.broadcast %cst_32 : f32 to vector<8x256xf32>
    %61 = arith.mulf %60, %59 : vector<8x256xf32>
    %cst_33 = arith.constant 0.707106769 : f32
    %62 = vector.broadcast %cst_33 : f32 to vector<8x256xf32>
    %63 = arith.mulf %59, %62 : vector<8x256xf32>
    %64 = math.absf %63 : vector<8x256xf32>
    %cst_34 = arith.constant 0.327591091 : f32
    %65 = vector.broadcast %cst_34 : f32 to vector<8x256xf32>
    %66 = arith.mulf %65, %64 : vector<8x256xf32>
    %cst_35 = arith.constant 1.000000e+00 : f32
    %67 = vector.broadcast %cst_35 : f32 to vector<8x256xf32>
    %68 = arith.addf %67, %66 : vector<8x256xf32>
    %cst_36 = arith.constant 1.000000e+00 : f32
    %69 = vector.broadcast %cst_36 : f32 to vector<8x256xf32>
    %70 = arith.divf %69, %68 : vector<8x256xf32>
    %cst_37 = arith.constant 1.06140542 : f32
    %71 = vector.broadcast %cst_37 : f32 to vector<8x256xf32>
    %72 = arith.mulf %71, %70 : vector<8x256xf32>
    %cst_38 = arith.constant -1.45315206 : f32
    %73 = vector.broadcast %cst_38 : f32 to vector<8x256xf32>
    %74 = arith.addf %72, %73 : vector<8x256xf32>
    %75 = arith.mulf %74, %70 : vector<8x256xf32>
    %cst_39 = arith.constant 1.42141378 : f32
    %76 = vector.broadcast %cst_39 : f32 to vector<8x256xf32>
    %77 = arith.addf %75, %76 : vector<8x256xf32>
    %78 = arith.mulf %77, %70 : vector<8x256xf32>
    %cst_40 = arith.constant -0.284496725 : f32
    %79 = vector.broadcast %cst_40 : f32 to vector<8x256xf32>
    %80 = arith.addf %78, %79 : vector<8x256xf32>
    %81 = arith.mulf %80, %70 : vector<8x256xf32>
    %cst_41 = arith.constant 0.254829586 : f32
    %82 = vector.broadcast %cst_41 : f32 to vector<8x256xf32>
    %83 = arith.addf %81, %82 : vector<8x256xf32>
    %84 = arith.mulf %83, %70 : vector<8x256xf32>
    %cst_42 = arith.constant 0.000000e+00 : f32
    %85 = vector.broadcast %cst_42 : f32 to vector<8x256xf32>
    %86 = arith.subf %85, %64 : vector<8x256xf32>
    %87 = arith.mulf %86, %64 : vector<8x256xf32>
    %88 = math.exp %87 : vector<8x256xf32>
    %89 = arith.mulf %84, %88 : vector<8x256xf32>
    %cst_43 = arith.constant 1.000000e+00 : f32
    %90 = vector.broadcast %cst_43 : f32 to vector<8x256xf32>
    %91 = arith.subf %90, %89 : vector<8x256xf32>
    %cst_44 = arith.constant 0.000000e+00 : f32
    %92 = vector.broadcast %cst_44 : f32 to vector<8x256xf32>
    %93 = arith.cmpf olt, %63, %92 : vector<8x256xf32>
    %cst_45 = arith.constant 0.000000e+00 : f32
    %94 = vector.broadcast %cst_45 : f32 to vector<8x256xf32>
    %95 = arith.subf %94, %91 : vector<8x256xf32>
    %96 = arith.select %93, %95, %91 : vector<8x256xi1>, vector<8x256xf32>
    %cst_46 = arith.constant 1.000000e+00 : f32
    %97 = vector.broadcast %cst_46 : f32 to vector<8x256xf32>
    %98 = arith.addf %97, %96 : vector<8x256xf32>
    %99 = arith.mulf %61, %98 : vector<8x256xf32>
    %cst_47 = arith.constant dense<0.000000e+00> : vector<32x256xf32>
    %100 = tpu.matmul %2, %99, %cst_47 {dimension_numbers = #tpu.dot_dimension_numbers<[1], [0], [0], [1], [0, 0, 1, 1], [], []>} : vector<32x8xf32>, vector<8x256xf32>, vector<32x256xf32> -> vector<32x256xf32>
    %101 = vector.broadcast %3 : vector<32x1xf32> to vector<32x256xf32>
    %102 = arith.addf %100, %101 : vector<32x256xf32>
    %c1_48 = arith.constant 1 : index
    %c0_49 = arith.constant 0 : index
    %c0_50 = arith.constant 0 : index
    %103 = vector.load %arg7[%c1_48, %c0_49, %c0_50] : memref<2x32x256xf32, #tpu.memory_space<vmem>>, vector<1x32x256xf32>
    %104 = vector.shape_cast %103 : vector<1x32x256xf32> to vector<32x256xf32>
    %105 = vector.shape_cast %102 : vector<32x256xf32> to vector<1x32x256xf32>
    tpu.vector_store %arg7[%c1_48, %c0_49, %c0_50], %105 {strides = array<i32>} : memref<2x32x256xf32, #tpu.memory_space<vmem>>, vector<1x32x256xf32>,
    return
  }
  func.func @transform_0(%arg0: i32, %arg1: i32) -> (i32, i32, i32) {
    %c0_i32 = arith.constant 0 : i32
    %c0_i32_0 = arith.constant 0 : i32
    return %arg0, %c0_i32, %arg1 : i32, i32, i32
  }
  func.func @transform_1(%arg0: i32, %arg1: i32) -> (i32, i32) {
    %c0_i32 = arith.constant 0 : i32
    %c0_i32_0 = arith.constant 0 : i32
    %c0_i32_1 = arith.constant 0 : i32
    return %c0_i32, %c0_i32_0 : i32, i32
  }
  func.func @transform_2(%arg0: i32, %arg1: i32) -> (i32, i32) {
    %c0_i32 = arith.constant 0 : i32
    %c0_i32_0 = arith.constant 0 : i32
    %c0_i32_1 = arith.constant 0 : i32
    return %c0_i32, %c0_i32_0 : i32, i32
  }
  func.func @transform_3(%arg0: i32, %arg1: i32) -> (i32, i32) {
    %c0_i32 = arith.constant 0 : i32
    %c0_i32_0 = arith.constant 0 : i32
    %c0_i32_1 = arith.constant 0 : i32
    return %c0_i32, %c0_i32_0 : i32, i32
  }
  func.func @transform_4(%arg0: i32, %arg1: i32) -> (i32, i32) {
    %c0_i32 = arith.constant 0 : i32
    %c0_i32_0 = arith.constant 0 : i32
    %c0_i32_1 = arith.constant 0 : i32
    return %c0_i32, %c0_i32_0 : i32, i32
  }
  func.func @transform_5(%arg0: i32, %arg1: i32) -> (i32, i32, i32) {
    %c0_i32 = arith.constant 0 : i32
    %c0_i32_0 = arith.constant 0 : i32
    return %arg0, %c0_i32, %arg1 : i32, i32, i32
  }
}

</mosaic_0001>

<bundles_post_ra>
// kernel: conv_adapter_branch.1
= control target key start
LH: loop header
LB: loop body
LE: loop exit
PB: predicated region body
PF: predicated region fallthrough
CT: control target
= control target key end

     0   :  { %v602_v3 = vmov 0.0   ;;  %v603_v4 = vmov 0   ;;  %vm43_vm0 = vcmask 261120   ;;  %vm192_vm3 = vcmask 64512   ;;  %s830_s0 = inlined_call_operand.vmem [shape: f32[2,32,256], index: 0, kind: input, shape index: {}]   ;;  %s831_s2 = inlined_call_operand.vmem [shape: f32[8,1], index: 2, kind: input, shape index: {}]   ;;  %s832_s4 = inlined_call_operand.vmem [shape: f32[32,1], index: 4, kind: input, shape index: {}]   ;;  %s833_s1 = inlined_call_operand.vmem [shape: f32[8,32], index: 1, kind: input, shape index: {}]   ;;  %s834_s3 = inlined_call_operand.vmem [shape: f32[32,8], index: 3, kind: input, shape index: {}]   ;;  %s835_s5 = inlined_call_operand.vmem [shape: f32[2,32,256], index: 5, kind: output, shape index: {}]  }
   0x1   :  { %v31_v0 = vld [vmem:[%s830_s0 + $0x8] sm:$0xff]  ;;  %v33_v1 = vld [vmem:[%s830_s0 + $0x18] sm:$0xff]  ;;  %v30_v2 = vld [vmem:[%s830_s0] sm:$0xff]  ;;  %111 = vmatprep.mubr.f32.mxu0 %v602_v3  ;;  %584 = vset.pattern.permute.xlu0 %v603_v4 }
   0x2   :  { %v564_v5 = vpack.c.bf16 %v33_v1, %v31_v0  ;;  %v32_v6 = vld [vmem:[%s830_s0 + $0x10] sm:$0xff]  ;;  %v35_v7 = vld [vmem:[%s830_s0 + $0x28] sm:$0xff]  ;;  %v37_v8 = vld [vmem:[%s830_s0 + $0x38] sm:$0xff]  ;;  %281 = vmatprep.mubr.f32.mxu1 %v602_v3  ;;  %585 = vset.pattern.permute.xlu1 %v603_v4 }
   0x3   :  { %v566_v9 = vpack.c.bf16 %v32_v6, %v30_v2  ;;  %v568_v10 = vpack.c.bf16 %v37_v8, %v35_v7  ;;  %v34_v11 = vld [vmem:[%s830_s0 + $0x20] sm:$0xff]  ;;  %v36_v12 = vld [vmem:[%s830_s0 + $0x30] sm:$0xff]  ;;  %v29_v17 = vld [vmem:[%s832_s4 + $0x18] sm:$0xff] }
   0x4   :  { %565 = vmatprep.subr.bf16.mxu0 %v564_v5  ;;  %v21_v13 = vld [vmem:[%s831_s2] sm:$0xff]  ;;  %v570_v14 = vpack.c.bf16 %v36_v12, %v34_v11  ;;  %v27_v18 = vld [vmem:[%s832_s4 + $0x8] sm:$0xff]  ;;  %v545_v12 = vld [vmem:[%s830_s0 + $0x50] sm:$0xff] }
   0x5   :  { %567 = vmatpush1.bf16.msra.mxu0 %v566_v9  ;;  %40 = vperm.xlu0 %584, %v21_v13   ;;  %v26_v15 = vld [vmem:[%s832_s4] sm:$0xff]  ;;  %v544_v8 = vld [vmem:[%s830_s0 + $0x48] sm:$0xff]  ;;  %v546_v9 = vld [vmem:[%s830_s0 + $0x58] sm:$0xff] }
   0x6   :  { %569 = vmatprep.subr.bf16.mxu0 %v568_v10  ;;  %v669_v16 = vld [vmem:[%s833_s1] sm:$0xff]  ;;  %179 = vperm.xlu1 %585, %v27_v18  }
   0x7   :  { %v543_v11 = vld [vmem:[%s830_s0 + $0x40] sm:$0xff] }
   0x8   :  { %v705_v18 = vld [vmem:[%s834_s3] sm:$0xff] }
   0x9   :  { %571 = vmatpush1.bf16.msra.mxu0 %v570_v14  ;;  %174 = vperm.xlu0 %584, %v26_v15   ;;  %v548_v14 = vld [vmem:[%s830_s0 + $0x68] sm:$0xff]  ;;  %v550_v15 = vld [vmem:[%s830_s0 + $0x78] sm:$0xff] }
   0xc   :  { %538 = vmatmul.mubr.msk.f32.vlgmr.msra.gmra.mrb[0].mxu0 %vm43_vm0, %v669_v16 }
   0xd   :  { %189 = vperm.xlu0 %584, %v29_v17   ;;  %269 = vmatprep.mubr.f32.mxu0 %v602_v3 }
  0x84   :  { %v680_v19 = vpop.permute.xlu0 %40 }
  0xdf   :  { %v113_v20 = vpop.f32.mrb[0].mxu0 }
  0xe0   :  { %v114_v21 = vadd.f32 %v113_v20, %v680_v19  ;;  %v115_v22 = vpop.f32.mrb[1].mxu0  ;;  %v710_v20 = vld [vmem:[%s834_s3 + $0x10] sm:$0xff] }
  0xe1   :  { %v116_v23 = vadd.f32 %v115_v22, %v680_v19  ;;  %v574_v22 = vpack.c.bf16 %v545_v12, %v543_v11 }
  0xe2   :  { %v120_v24 = vmul.f32 0.70710677, %v114_v21  ;;  %v118_v10 = vmul.f32 0.5, %v114_v21  ;;  %v572_v21 = vpack.c.bf16 %v546_v9, %v544_v8 }
  0xe3   :  { %v121_v25 = vmul.f32 0.70710677, %v116_v23  ;;  %v119_v6 = vmul.f32 0.5, %v116_v23  ;;  %v576_v23 = vpack.c.bf16 %v550_v15, %v548_v14 }
  0xe4   :  { %v122_v26 = vand.u32 2147483647, %v120_v24  ;;  %vm162_vm1 = vcmp.lt.f32.partialorder %v120_v24, 0.0  ;;  %v547_v24 = vld [vmem:[%s830_s0 + $0x60] sm:$0xff] }
  0xe5   :  { %v123_v27 = vand.u32 2147483647, %v121_v25  ;;  %vm163_vm2 = vcmp.lt.f32.partialorder %v121_v25, 0.0  ;;  %v549_v25 = vld [vmem:[%s830_s0 + $0x70] sm:$0xff] }
  0xe6   :  { %v124_v28 = vmul.f32 0.3275911, %v122_v26  ;;  %v150_v32 = vsub.f32 0.0, %v122_v26 }
  0xe7   :  { %v125_v29 = vmul.f32 0.3275911, %v123_v27  ;;  %v151_v33 = vsub.f32 0.0, %v123_v27 }
  0xe8   :  { %v126_v30 = vadd.f32 1.0, %v124_v28  ;;  %v152_v35 = vmul.f32 %v150_v32, %v122_v26  ;;  %v726_v26 = vld [vmem:[%s834_s3 + $0x8] sm:$0xff]  ;;  %v578_v28 = vpack.c.bf16 %v549_v25, %v547_v24 }
  0xe9   :  { %v127_v31 = vadd.f32 1.0, %v125_v29  ;;  %v153_v38 = vmul.f32 %v151_v33, %v123_v27  ;;  %v731_v27 = vld [vmem:[%s834_s3 + $0x18] sm:$0xff]  ;;  %v28_v29 = vld [vmem:[%s832_s4 + $0x10] sm:$0xff] }
  0xea   :  { %586 = vrcp.f32 %v126_v30  ;;  %v154_v41 = vmul.f32 1.442695, %v152_v35  ;;  %184 = vperm.xlu1 %585, %v28_v29   ;;  %v745_v30 = vpop.permute.xlu0 %174 }
  0xeb   :  { %588 = vrcp.f32 %v127_v31  ;;  %v156_v44 = vmul.f32 1.442695, %v153_v38 }
  0xec   :  { %590 = vpow2.f32 %v154_v41 }
  0xed   :  { %592 = vpow2.f32 %v156_v44 }
  0xf4   :  { %v587_v34 = vpop.eup %586 }
  0xf5   :  { %v589_v36 = vpop.eup %588  ;;  %v132_v37 = vmul.f32 1.0614054, %v587_v34 }
  0xf6   :  { %v133_v39 = vmul.f32 1.0614054, %v589_v36  ;;  %v591_v57 = vpop.eup %590 }
  0xf7   :  { %v134_v40 = vadd.f32 -1.4531521, %v132_v37  ;;  %v593_v59 = vpop.eup %592  ;;  %v753_v37 = vpop.permute.xlu1 %179 }
  0xf8   :  { %v135_v42 = vadd.f32 -1.4531521, %v133_v39 }
  0xf9   :  { %v136_v43 = vmul.f32 %v587_v34, %v134_v40 }
  0xfa   :  { %v137_v45 = vmul.f32 %v589_v36, %v135_v42 }
  0xfb   :  { %v138_v46 = vadd.f32 1.4214138, %v136_v43 }
  0xfc   :  { %v139_v47 = vadd.f32 1.4214138, %v137_v45 }
  0xfd   :  { %v140_v48 = vmul.f32 %v587_v34, %v138_v46 }
  0xfe   :  { %v141_v49 = vmul.f32 %v589_v36, %v139_v47 }
  0xff   :  { %v142_v50 = vadd.f32 -0.28449672, %v140_v48 }
 0x100   :  { %v143_v51 = vadd.f32 -0.28449672, %v141_v49 }
 0x101   :  { %v144_v52 = vmul.f32 %v587_v34, %v142_v50 }
 0x102   :  { %v145_v53 = vmul.f32 %v589_v36, %v143_v51 }
 0x103   :  { %v146_v54 = vadd.f32 0.2548296, %v144_v52 }
 0x104   :  { %v147_v55 = vadd.f32 0.2548296, %v145_v53 }
 0x105   :  { %v148_v56 = vmul.f32 %v587_v34, %v146_v54 }
 0x106   :  { %v149_v58 = vmul.f32 %v589_v36, %v147_v55 }
 0x107   :  { %v158_v60 = vmul.f32 %v591_v57, %v148_v56 }
 0x108   :  { %v159_v61 = vmul.f32 %v593_v59, %v149_v58 }
 0x109   :  { %v160_v62 = vsub.f32 1.0, %v158_v60 }
 0x10a   :  { %v161_v63 = vsub.f32 1.0, %v159_v61 }
 0x10b   :  { %v164_v0 = vsub.f32 0.0, %v160_v62 }
 0x10c   :  { %v165_v1 = vsub.f32 0.0, %v161_v63 }
 0x10d   :  { %v166_v2 = vsel %vm162_vm1, %v164_v0, %v160_v62 }
 0x10e   :  { %v168_v4 = vadd.f32 1.0, %v166_v2  ;;  %v167_v5 = vsel %vm163_vm2, %v165_v1, %v161_v63 }
 0x10f   :  { %v169_v7 = vadd.f32 1.0, %v167_v5 }
 0x110   :  { %v170_v17 = vmul.f32 %v168_v4, %v118_v10 }
 0x111   :  { %v171_v13 = vmul.f32 %v169_v7, %v119_v6 }
 0x113   :  { %205 = vmatprep.subr.mxu0 %v171_v13  ;;  %580 = vmatprep.subr.mxu1 %v171_v13 }
 0x114   :  { %206 = vmatpush1.msra.mxu0 %v170_v17  ;;  %581 = vmatpush1.msra.mxu1 %v170_v17 }
 0x115   :  { %539 = vmatmul.mubr.msk.f32.vlgmr.msra.gmra.mrb[2].mxu0 %vm192_vm3, %v705_v18  ;;  %541 = vmatmul.mubr.msk.f32.vlgmr.msra.gmra.mrb[0].mxu1 %vm192_vm3, %v710_v20 }
 0x116   :  { %573 = vmatprep.subr.bf16.mxu0 %v572_v21  ;;  %275 = vmatprep.mubr.f32.mxu0 %v602_v3 }
 0x117   :  { %575 = vmatpush1.bf16.msra.mxu0 %v574_v22  ;;  %287 = vmatprep.mubr.f32.mxu1 %v602_v3 }
 0x118   :  { %577 = vmatprep.subr.bf16.mxu0 %v576_v23 }
 0x119   :  { %540 = vmatmul.mubr.msk.f32.gmra.mrb[4].mxu0 %vm192_vm3, %v726_v26  ;;  %542 = vmatmul.mubr.msk.f32.gmra.mrb[2].mxu1 %vm192_vm3, %v731_v27 }
 0x11a   :  { %375 = vmatprep.mubr.f32.mxu0 %v602_v3  ;;  %500 = vmatprep.mubr.f32.mxu1 %v602_v3 }
 0x11b   :  { %579 = vmatpush1.bf16.msra.mxu0 %v578_v28 }
 0x11e   :  { %551 = vmatmul.mubr.msk.f32.vlgmr.msra.gmra.mrb[6].mxu0 %vm43_vm0, %v669_v16  ;;  %v755_v16 = vpop.permute.xlu0 %189 }
 0x1e8   :  { %v271_v31 = vpop.f32.mrb[2].mxu0  ;;  %v747_v32 = vpop.f32.mrb[0].mxu1 }
 0x1e9   :  { %v272_v33 = vadd.f32 %v271_v31, %v745_v30  ;;  %v273_v34 = vpop.f32.mrb[3].mxu0  ;;  %v750_v35 = vpop.f32.mrb[1].mxu1 }
 0x1ea   :  { %v274_v36 = vadd.f32 %v273_v34, %v745_v30 }
 0x1eb   :  { %294 = vst [vmem:[%s835_s5] sm:$0xff] %v272_v33 }
 0x1ec   :  { %295 = vst [vmem:[%s835_s5 + $0x8] sm:$0xff] %v274_v36  ;;  %v277_v38 = vpop.f32.mrb[4].mxu0  ;;  %v289_v39 = vpop.f32.mrb[2].mxu1 }
 0x1ed   :  { %v278_v40 = vadd.f32 %v277_v38, %v753_v37  ;;  %v290_v41 = vadd.f32 %v289_v39, %v755_v16  ;;  %v279_v42 = vpop.f32.mrb[5].mxu0  ;;  %v291_v43 = vpop.f32.mrb[3].mxu1 }
 0x1ee   :  { %v280_v44 = vadd.f32 %v279_v42, %v753_v37  ;;  %v292_v45 = vadd.f32 %v291_v43, %v755_v16 }
 0x1ef   :  { %296 = vst [vmem:[%s835_s5 + $0x10] sm:$0xff] %v278_v40  ;;  %300 = vst [vmem:[%s835_s5 + $0x30] sm:$0xff] %v290_v41 }
 0x1f0   :  { %297 = vst [vmem:[%s835_s5 + $0x18] sm:$0xff] %v280_v44  ;;  %301 = vst [vmem:[%s835_s5 + $0x38] sm:$0xff] %v292_v45 }
 0x1f1   :  { %v377_v46 = vpop.f32.mrb[6].mxu0 }
 0x1f2   :  { %v378_v47 = vadd.f32 %v377_v46, %v680_v19  ;;  %v379_v48 = vpop.f32.mrb[7].mxu0  ;;  %v185_v46 = vpop.permute.xlu1 %184 }
 0x1f3   :  { %v380_v49 = vadd.f32 %v379_v48, %v680_v19 }
 0x1f4   :  { %v384_v50 = vmul.f32 0.70710677, %v378_v47  ;;  %v382_v43 = vmul.f32 0.5, %v378_v47  ;;  %v284_v47 = vadd.f32 %v747_v32, %v185_v46 }
 0x1f5   :  { %v385_v51 = vmul.f32 0.70710677, %v380_v49  ;;  %v383_v41 = vmul.f32 0.5, %v380_v49 }
 0x1f6   :  { %v386_v52 = vand.u32 2147483647, %v384_v50  ;;  %vm426_vm4 = vcmp.lt.f32.partialorder %v384_v50, 0.0  ;;  %298 = vst [vmem:[%s835_s5 + $0x20] sm:$0xff] %v284_v47 }
 0x1f7   :  { %v387_v53 = vand.u32 2147483647, %v385_v51  ;;  %vm427_vm5 = vcmp.lt.f32.partialorder %v385_v51, 0.0 }
 0x1f8   :  { %v388_v54 = vmul.f32 0.3275911, %v386_v52  ;;  %v414_v58 = vsub.f32 0.0, %v386_v52 }
 0x1f9   :  { %v389_v55 = vmul.f32 0.3275911, %v387_v53  ;;  %v415_v59 = vsub.f32 0.0, %v387_v53 }
 0x1fa   :  { %v390_v56 = vadd.f32 1.0, %v388_v54  ;;  %v416_v61 = vmul.f32 %v414_v58, %v386_v52 }
 0x1fb   :  { %v391_v57 = vadd.f32 1.0, %v389_v55  ;;  %v417_v0 = vmul.f32 %v415_v59, %v387_v53 }
 0x1fc   :  { %594 = vrcp.f32 %v390_v56  ;;  %v418_v19 = vmul.f32 1.442695, %v416_v61 }
 0x1fd   :  { %596 = vrcp.f32 %v391_v57  ;;  %v420_v6 = vmul.f32 1.442695, %v417_v0 }
 0x1fe   :  { %598 = vpow2.f32 %v418_v19 }
 0x1ff   :  { %600 = vpow2.f32 %v420_v6 }
 0x206   :  { %v595_v60 = vpop.eup %594 }
 0x207   :  { %v597_v62 = vpop.eup %596  ;;  %v396_v63 = vmul.f32 1.0614054, %v595_v60 }
 0x208   :  { %v397_v1 = vmul.f32 1.0614054, %v597_v62  ;;  %v599_v23 = vpop.eup %598 }
 0x209   :  { %v398_v2 = vadd.f32 -1.4531521, %v396_v63  ;;  %v601_v25 = vpop.eup %600 }
 0x20a   :  { %v399_v4 = vadd.f32 -1.4531521, %v397_v1 }
 0x20b   :  { %v400_v5 = vmul.f32 %v595_v60, %v398_v2 }
 0x20c   :  { %v401_v7 = vmul.f32 %v597_v62, %v399_v4 }
 0x20d   :  { %v402_v8 = vadd.f32 1.4214138, %v400_v5 }
 0x20e   :  { %v403_v9 = vadd.f32 1.4214138, %v401_v7 }
 0x20f   :  { %v404_v10 = vmul.f32 %v595_v60, %v402_v8 }
 0x210   :  { %v405_v11 = vmul.f32 %v597_v62, %v403_v9 }
 0x211   :  { %v406_v12 = vadd.f32 -0.28449672, %v404_v10 }
 0x212   :  { %v407_v13 = vadd.f32 -0.28449672, %v405_v11 }
 0x213   :  { %v408_v14 = vmul.f32 %v595_v60, %v406_v12 }
 0x214   :  { %v409_v15 = vmul.f32 %v597_v62, %v407_v13 }
 0x215   :  { %v410_v17 = vadd.f32 0.2548296, %v408_v14 }
 0x216   :  { %v411_v21 = vadd.f32 0.2548296, %v409_v15 }
 0x217   :  { %v412_v22 = vmul.f32 %v595_v60, %v410_v17 }
 0x218   :  { %v413_v24 = vmul.f32 %v597_v62, %v411_v21 }
 0x219   :  { %v422_v28 = vmul.f32 %v599_v23, %v412_v22 }
 0x21a   :  { %v423_v29 = vmul.f32 %v601_v25, %v413_v24 }
 0x21b   :  { %v424_v31 = vsub.f32 1.0, %v422_v28 }
 0x21c   :  { %v425_v33 = vsub.f32 1.0, %v423_v29 }
 0x21d   :  { %v428_v34 = vsub.f32 0.0, %v424_v31 }
 0x21e   :  { %v429_v36 = vsub.f32 0.0, %v425_v33 }
 0x21f   :  { %v430_v38 = vsel %vm426_vm4, %v428_v34, %v424_v31 }
 0x220   :  { %v432_v39 = vadd.f32 1.0, %v430_v38  ;;  %v431_v40 = vsel %vm427_vm5, %v429_v36, %v425_v33 }
 0x221   :  { %v433_v42 = vadd.f32 1.0, %v431_v40 }
 0x222   :  { %v434_v45 = vmul.f32 %v432_v39, %v382_v43 }
 0x223   :  { %v435_v44 = vmul.f32 %v433_v42, %v383_v41 }
 0x225   :  { %436 = vmatprep.subr.mxu1 %v435_v44 }
 0x226   :  { %437 = vmatpush1.msra.mxu1 %v434_v45 }
 0x227   :  { %552 = vmatmul.mubr.msk.f32.vlgmr.msra.gmra.mrb[4].mxu1 %vm192_vm3, %v705_v18  ;;  %v286_v18 = vadd.f32 %v750_v35, %v185_v46 }
 0x228   :  { %506 = vmatprep.mubr.f32.mxu1 %v602_v3 }
 0x229   :  { %299 = vst [vmem:[%s835_s5 + $0x28] sm:$0xff] %v286_v18 }
 0x22b   :  { %553 = vmatmul.mubr.msk.f32.gmra.mrb[6].mxu1 %vm192_vm3, %v726_v26 }
 0x22c   :  { %512 = vmatprep.mubr.f32.mxu1 %v602_v3 }
 0x22f   :  { %554 = vmatmul.mubr.msk.f32.gmra.mrb[8].mxu1 %vm192_vm3, %v710_v20 }
 0x230   :  { %518 = vmatprep.mubr.f32.mxu1 %v602_v3 }
 0x233   :  { %555 = vmatmul.mubr.msk.f32.gmra.mrb[10].mxu1 %vm192_vm3, %v731_v27 }
 0x2fa   :  { %v502_v26 = vpop.f32.mrb[4].mxu1 }
 0x2fb   :  { %v503_v20 = vadd.f32 %v502_v26, %v745_v30  ;;  %v504_v3 = vpop.f32.mrb[5].mxu1 }
 0x2fc   :  { %v505_v48 = vadd.f32 %v504_v3, %v745_v30 }
 0x2fd   :  { %556 = vst [vmem:[%s835_s5 + $0x40] sm:$0xff] %v503_v20 }
 0x2fe   :  { %557 = vst [vmem:[%s835_s5 + $0x48] sm:$0xff] %v505_v48  ;;  %v508_v27 = vpop.f32.mrb[6].mxu1 }
 0x2ff   :  { %v509_v32 = vadd.f32 %v508_v27, %v753_v37  ;;  %v510_v35 = vpop.f32.mrb[7].mxu1 }
 0x300   :  { %v511_v49 = vadd.f32 %v510_v35, %v753_v37 }
 0x301   :  { %558 = vst [vmem:[%s835_s5 + $0x50] sm:$0xff] %v509_v32 }
 0x302   :  { %559 = vst [vmem:[%s835_s5 + $0x58] sm:$0xff] %v511_v49  ;;  %v514_v30 = vpop.f32.mrb[8].mxu1 }
 0x303   :  { %v515_v50 = vadd.f32 %v514_v30, %v185_v46  ;;  %v516_v51 = vpop.f32.mrb[9].mxu1 }
 0x304   :  { %v517_v52 = vadd.f32 %v516_v51, %v185_v46 }
 0x305   :  { %560 = vst [vmem:[%s835_s5 + $0x60] sm:$0xff] %v515_v50 }
 0x306   :  { %561 = vst [vmem:[%s835_s5 + $0x68] sm:$0xff] %v517_v52  ;;  %v520_v37 = vpop.f32.mrb[10].mxu1 }
 0x307   :  { %v521_v53 = vadd.f32 %v520_v37, %v755_v16  ;;  %v522_v54 = vpop.f32.mrb[11].mxu1 }
 0x308   :  { %v523_v55 = vadd.f32 %v522_v54, %v755_v16 }
 0x309   :  { %562 = vst [vmem:[%s835_s5 + $0x70] sm:$0xff] %v521_v53 }
 0x30a   :  { %563 = vst [vmem:[%s835_s5 + $0x78] sm:$0xff] %v523_v55 }

</bundles_post_ra>
